<compile_context>
chip_gen: v6e
topology: v6e:2x2x1
jax: 0.10.0
libtpu: 0.0.40
codegen_flags: <defaults>
</compile_context>

<pallas_src>
import jax
import jax.numpy as jnp
import numpy as np
from jax import lax
from jax.experimental import pallas as pl
from jax.experimental.pallas import tpu as pltpu

_PI = 3.14159265358979323846
_PIO2 = 1.57079632679489661923


def _acos(x):
    """float32 arccos built from mul/add/sqrt/div/select (musl-style asinf core).

    lax.acos has no Pallas/Mosaic TPU lowering, so it is implemented in-kernel.
    The rational correction _R is evaluated once on a branch-selected argument.
    Max abs error ~1e-7 rad (float32-level agreement with torch.acos).
    """
    pS0 = 1.6666586697e-01
    pS1 = -4.2743422091e-02
    pS2 = -8.6563630030e-03
    qS1 = -7.0662963390e-01

    ax = jnp.abs(x)
    small = ax < 0.5

    # Shared polynomial argument:  |x|<0.5 -> x^2 ; else (1-|x|)/2.
    z = jnp.where(small, x * x, (1.0 - ax) * 0.5)
    p = z * (pS0 + z * (pS1 + z * pS2))
    q = 1.0 + z * qS1
    r = p / q

    # |x| < 0.5 :  acos(x) = pi/2 - asin(x),  asin(x) ~ x + x*r
    acos_small = _PIO2 - (x + x * r)

    # |x| >= 0.5 : acos(|x|) = 2*asin(sqrt((1-|x|)/2)),  acos(-|x|) = pi - acos(|x|)
    s = jnp.sqrt(z)                      # harmless in the small branch (discarded)
    a = 2.0 * (s + s * r)
    acos_big = jnp.where(x < 0.0, _PI - a, a)

    return jnp.where(small, acos_small, acos_big)


def _loss_ar_kernel(rl_ref, rr_ref, ll_ref, lr_ref, out_ref):
    rl = rl_ref[...]                                     # (B, D) left-eye result
    rr = rr_ref[...]                                     # (B, D) right-eye result
    ll = ll_ref[...]                                     # (B, D) left-eye label
    lr = lr_ref[...]                                     # (B, D) right-eye label
    b = rl.shape[0]
    inv_b = 1.0 / b

    def _cos(res, lab):
        # Per-sample dot / squared norms: tiny cross-lane reductions over D=3.
        up = jnp.sum(res * lab, axis=1, keepdims=True)   # (B, 1)
        nr = jnp.sum(res * res, axis=1, keepdims=True)   # (B, 1)
        nl = jnp.sum(lab * lab, axis=1, keepdims=True)   # (B, 1)
        # Merged normalisation: one EUP rsqrt push instead of two.
        return jnp.clip(up * lax.rsqrt(nr * nl), -1.0, 1.0)

    ang_l = _acos(_cos(rl, ll))                          # (B, 1)
    ang_r = _acos(_cos(rr, lr))                          # (B, 1)

    # Harmonic-mean-style per-sample combination, then batch reductions.
    # NOTE: like the PyTorch reference, 0/0 (both angles exactly zero) or a
    # zero-norm gaze vector yields NaN; semantics intentionally preserved.
    harm = 2.0 * ang_r * ang_l / (ang_r + ang_l)         # (B, 1)

    l_ar = jnp.sum(harm, axis=0, keepdims=True)          # (1, 1)
    m_l = jnp.sum(ang_l, axis=0, keepdims=True) * inv_b  # (1, 1)
    m_r = jnp.sum(ang_r, axis=0, keepdims=True) * inv_b  # (1, 1)

    # Pack the three scalars into one lane-dense output row: one store, one DMA.
    lane = lax.broadcasted_iota(jnp.int32, out_ref.shape, 1)
    out_ref[...] = (jnp.where(lane == 0, l_ar, 0.0)
                    + jnp.where(lane == 1, m_l, 0.0)
                    + jnp.where(lane == 2, m_r, 0.0))


@jax.jit
def _loss_ar_row(result_l, result_r, label_l, label_r):
    B, D = result_l.shape
    args = tuple(a.astype(jnp.float32) for a in (result_l, result_r, label_l, label_r))

    vmem = pl.BlockSpec(memory_space=pltpu.MemorySpace.VMEM)
    out = pl.pallas_call(
        _loss_ar_kernel,
        out_shape=jax.ShapeDtypeStruct((1, 128), jnp.float32),
        in_specs=[vmem, vmem, vmem, vmem],
        out_specs=vmem,
        cost_estimate=pl.CostEstimate(
            flops=int(2 * B * (6 * D + 40)),
            transcendentals=int(4 * B),
            bytes_accessed=int(4 * B * D * 4 + 512),
        ),
    )(*args)
    # Single lane-dense slice inside the jit; tuple unpack happens outside.
    return out[0, :3]


def loss_ar(result_l, result_r, label_l, label_r):
    row = _loss_ar_row(result_l, result_r, label_l, label_r)
    return row[0], row[1], row[2]


def _loss_ar_ref(rl, rr, ll, lr):
    # pure-JAX reference mirroring the PyTorch forward exactly
    def ang(res, lab):
        up = jnp.sum(res * lab, axis=1)
        d = jnp.sqrt(jnp.sum(res ** 2, axis=1)) * jnp.sqrt(jnp.sum(lab ** 2, axis=1))
        return jnp.arccos(jnp.clip(up / d, -1.0, 1.0))

    al = ang(rl, ll)
    ar = ang(rr, lr)
    l_ar = jnp.sum(2.0 * ar * al / (ar + al), axis=0)
    return l_ar, al.mean(), ar.mean()


if __name__ == "__main__":
    key = jax.random.PRNGKey(0)
    k1, k2, k3, k4 = jax.random.split(key, 4)
    B, D = 16, 3  # batch of 16 gaze vectors, 3-D direction vectors
    result_l = jax.random.normal(k1, (B, D), dtype=jnp.float32)
    result_r = jax.random.normal(k2, (B, D), dtype=jnp.float32)
    label_l = jax.random.normal(k3, (B, D), dtype=jnp.float32)
    label_r = jax.random.normal(k4, (B, D), dtype=jnp.float32)

    out = loss_ar(result_l, result_r, label_l, label_r)
    out = jax.block_until_ready(out)

    ref = _loss_ar_ref(result_l, result_r, label_l, label_r)
    np.testing.assert_allclose(
        np.array([float(o) for o in out]),
        np.array([float(r) for r in ref]),
        rtol=1e-5, atol=1e-5,
    )
    print("KERNEL_OK")
</pallas_src>

<mosaic_0001>
module attributes {stable_mosaic.version = 11 : i64} {
  func.func @_loss_ar_kernel(%arg0: memref<16x3xf32, #tpu.memory_space<vmem>>, %arg1: memref<16x3xf32, #tpu.memory_space<vmem>>, %arg2: memref<16x3xf32, #tpu.memory_space<vmem>>, %arg3: memref<16x3xf32, #tpu.memory_space<vmem>>, %arg4: memref<1x128xf32, #tpu.memory_space<vmem>>) attributes {dimension_semantics = [], scalar_prefetch = 0 : i64, scratch_operands = 0 : i64, tpu.core_type = #tpu.core_type<tc>} {
    %c0 = arith.constant 0 : index
    %c0_0 = arith.constant 0 : index
    %0 = vector.load %arg0[%c0, %c0_0] : memref<16x3xf32, #tpu.memory_space<vmem>>, vector<16x3xf32>
    %c0_1 = arith.constant 0 : index
    %c0_2 = arith.constant 0 : index
    %1 = vector.load %arg1[%c0_1, %c0_2] : memref<16x3xf32, #tpu.memory_space<vmem>>, vector<16x3xf32>
    %c0_3 = arith.constant 0 : index
    %c0_4 = arith.constant 0 : index
    %2 = vector.load %arg2[%c0_3, %c0_4] : memref<16x3xf32, #tpu.memory_space<vmem>>, vector<16x3xf32>
    %c0_5 = arith.constant 0 : index
    %c0_6 = arith.constant 0 : index
    %3 = vector.load %arg3[%c0_5, %c0_6] : memref<16x3xf32, #tpu.memory_space<vmem>>, vector<16x3xf32>
    %4 = arith.mulf %0, %2 : vector<16x3xf32>
    %cst = arith.constant dense<0.000000e+00> : vector<16xf32>
    %5 = vector.multi_reduction <add>, %4, %cst [1] : vector<16x3xf32> to vector<16xf32>
    %6 = vector.shape_cast %5 : vector<16xf32> to vector<16x1xf32>
    %7 = arith.mulf %0, %0 : vector<16x3xf32>
    %cst_7 = arith.constant dense<0.000000e+00> : vector<16xf32>
    %8 = vector.multi_reduction <add>, %7, %cst_7 [1] : vector<16x3xf32> to vector<16xf32>
    %9 = vector.shape_cast %8 : vector<16xf32> to vector<16x1xf32>
    %10 = arith.mulf %2, %2 : vector<16x3xf32>
    %cst_8 = arith.constant dense<0.000000e+00> : vector<16xf32>
    %11 = vector.multi_reduction <add>, %10, %cst_8 [1] : vector<16x3xf32> to vector<16xf32>
    %12 = vector.shape_cast %11 : vector<16xf32> to vector<16x1xf32>
    %13 = arith.mulf %9, %12 : vector<16x1xf32>
    %14 = math.rsqrt %13 : vector<16x1xf32>
    %15 = arith.mulf %6, %14 : vector<16x1xf32>
    %cst_9 = arith.constant -1.000000e+00 : f32
    %cst_10 = arith.constant 1.000000e+00 : f32
    %16 = vector.broadcast %cst_9 : f32 to vector<16x1xf32>
    %17 = arith.maximumf %16, %15 : vector<16x1xf32>
    %18 = vector.broadcast %cst_10 : f32 to vector<16x1xf32>
    %19 = arith.minimumf %18, %17 : vector<16x1xf32>
    %20 = math.absf %19 : vector<16x1xf32>
    %cst_11 = arith.constant 5.000000e-01 : f32
    %21 = vector.broadcast %cst_11 : f32 to vector<16x1xf32>
    %22 = arith.cmpf olt, %20, %21 : vector<16x1xf32>
    %23 = arith.mulf %19, %19 : vector<16x1xf32>
    %cst_12 = arith.constant 1.000000e+00 : f32
    %24 = vector.broadcast %cst_12 : f32 to vector<16x1xf32>
    %25 = arith.subf %24, %20 : vector<16x1xf32>
    %cst_13 = arith.constant 5.000000e-01 : f32
    %26 = vector.broadcast %cst_13 : f32 to vector<16x1xf32>
    %27 = arith.mulf %25, %26 : vector<16x1xf32>
    %28 = arith.select %22, %23, %27 : vector<16x1xi1>, vector<16x1xf32>
    %cst_14 = arith.constant -0.008656363 : f32
    %29 = vector.broadcast %cst_14 : f32 to vector<16x1xf32>
    %30 = arith.mulf %28, %29 : vector<16x1xf32>
    %cst_15 = arith.constant -0.0427434221 : f32
    %31 = vector.broadcast %cst_15 : f32 to vector<16x1xf32>
    %32 = arith.addf %31, %30 : vector<16x1xf32>
    %33 = arith.mulf %28, %32 : vector<16x1xf32>
    %cst_16 = arith.constant 0.166665867 : f32
    %34 = vector.broadcast %cst_16 : f32 to vector<16x1xf32>
    %35 = arith.addf %34, %33 : vector<16x1xf32>
    %36 = arith.mulf %28, %35 : vector<16x1xf32>
    %cst_17 = arith.constant -0.706629634 : f32
    %37 = vector.broadcast %cst_17 : f32 to vector<16x1xf32>
    %38 = arith.mulf %28, %37 : vector<16x1xf32>
    %cst_18 = arith.constant 1.000000e+00 : f32
    %39 = vector.broadcast %cst_18 : f32 to vector<16x1xf32>
    %40 = arith.addf %39, %38 : vector<16x1xf32>
    %41 = arith.divf %36, %40 : vector<16x1xf32>
    %42 = arith.mulf %19, %41 : vector<16x1xf32>
    %43 = arith.addf %19, %42 : vector<16x1xf32>
    %cst_19 = arith.constant 1.57079637 : f32
    %44 = vector.broadcast %cst_19 : f32 to vector<16x1xf32>
    %45 = arith.subf %44, %43 : vector<16x1xf32>
    %46 = math.sqrt %28 : vector<16x1xf32>
    %47 = arith.mulf %46, %41 : vector<16x1xf32>
    %48 = arith.addf %46, %47 : vector<16x1xf32>
    %cst_20 = arith.constant 2.000000e+00 : f32
    %49 = vector.broadcast %cst_20 : f32 to vector<16x1xf32>
    %50 = arith.mulf %49, %48 : vector<16x1xf32>
    %cst_21 = arith.constant 0.000000e+00 : f32
    %51 = vector.broadcast %cst_21 : f32 to vector<16x1xf32>
    %52 = arith.cmpf olt, %19, %51 : vector<16x1xf32>
    %cst_22 = arith.constant 3.14159274 : f32
    %53 = vector.broadcast %cst_22 : f32 to vector<16x1xf32>
    %54 = arith.subf %53, %50 : vector<16x1xf32>
    %55 = arith.select %52, %54, %50 : vector<16x1xi1>, vector<16x1xf32>
    %56 = arith.select %22, %45, %55 : vector<16x1xi1>, vector<16x1xf32>
    %57 = arith.mulf %1, %3 : vector<16x3xf32>
    %cst_23 = arith.constant dense<0.000000e+00> : vector<16xf32>
    %58 = vector.multi_reduction <add>, %57, %cst_23 [1] : vector<16x3xf32> to vector<16xf32>
    %59 = vector.shape_cast %58 : vector<16xf32> to vector<16x1xf32>
    %60 = arith.mulf %1, %1 : vector<16x3xf32>
    %cst_24 = arith.constant dense<0.000000e+00> : vector<16xf32>
    %61 = vector.multi_reduction <add>, %60, %cst_24 [1] : vector<16x3xf32> to vector<16xf32>
    %62 = vector.shape_cast %61 : vector<16xf32> to vector<16x1xf32>
    %63 = arith.mulf %3, %3 : vector<16x3xf32>
    %cst_25 = arith.constant dense<0.000000e+00> : vector<16xf32>
    %64 = vector.multi_reduction <add>, %63, %cst_25 [1] : vector<16x3xf32> to vector<16xf32>
    %65 = vector.shape_cast %64 : vector<16xf32> to vector<16x1xf32>
    %66 = arith.mulf %62, %65 : vector<16x1xf32>
    %67 = math.rsqrt %66 : vector<16x1xf32>
    %68 = arith.mulf %59, %67 : vector<16x1xf32>
    %cst_26 = arith.constant -1.000000e+00 : f32
    %cst_27 = arith.constant 1.000000e+00 : f32
    %69 = vector.broadcast %cst_26 : f32 to vector<16x1xf32>
    %70 = arith.maximumf %69, %68 : vector<16x1xf32>
    %71 = vector.broadcast %cst_27 : f32 to vector<16x1xf32>
    %72 = arith.minimumf %71, %70 : vector<16x1xf32>
    %73 = math.absf %72 : vector<16x1xf32>
    %cst_28 = arith.constant 5.000000e-01 : f32
    %74 = vector.broadcast %cst_28 : f32 to vector<16x1xf32>
    %75 = arith.cmpf olt, %73, %74 : vector<16x1xf32>
    %76 = arith.mulf %72, %72 : vector<16x1xf32>
    %cst_29 = arith.constant 1.000000e+00 : f32
    %77 = vector.broadcast %cst_29 : f32 to vector<16x1xf32>
    %78 = arith.subf %77, %73 : vector<16x1xf32>
    %cst_30 = arith.constant 5.000000e-01 : f32
    %79 = vector.broadcast %cst_30 : f32 to vector<16x1xf32>
    %80 = arith.mulf %78, %79 : vector<16x1xf32>
    %81 = arith.select %75, %76, %80 : vector<16x1xi1>, vector<16x1xf32>
    %cst_31 = arith.constant -0.008656363 : f32
    %82 = vector.broadcast %cst_31 : f32 to vector<16x1xf32>
    %83 = arith.mulf %81, %82 : vector<16x1xf32>
    %cst_32 = arith.constant -0.0427434221 : f32
    %84 = vector.broadcast %cst_32 : f32 to vector<16x1xf32>
    %85 = arith.addf %84, %83 : vector<16x1xf32>
    %86 = arith.mulf %81, %85 : vector<16x1xf32>
    %cst_33 = arith.constant 0.166665867 : f32
    %87 = vector.broadcast %cst_33 : f32 to vector<16x1xf32>
    %88 = arith.addf %87, %86 : vector<16x1xf32>
    %89 = arith.mulf %81, %88 : vector<16x1xf32>
    %cst_34 = arith.constant -0.706629634 : f32
    %90 = vector.broadcast %cst_34 : f32 to vector<16x1xf32>
    %91 = arith.mulf %81, %90 : vector<16x1xf32>
    %cst_35 = arith.constant 1.000000e+00 : f32
    %92 = vector.broadcast %cst_35 : f32 to vector<16x1xf32>
    %93 = arith.addf %92, %91 : vector<16x1xf32>
    %94 = arith.divf %89, %93 : vector<16x1xf32>
    %95 = arith.mulf %72, %94 : vector<16x1xf32>
    %96 = arith.addf %72, %95 : vector<16x1xf32>
    %cst_36 = arith.constant 1.57079637 : f32
    %97 = vector.broadcast %cst_36 : f32 to vector<16x1xf32>
    %98 = arith.subf %97, %96 : vector<16x1xf32>
    %99 = math.sqrt %81 : vector<16x1xf32>
    %100 = arith.mulf %99, %94 : vector<16x1xf32>
    %101 = arith.addf %99, %100 : vector<16x1xf32>
    %cst_37 = arith.constant 2.000000e+00 : f32
    %102 = vector.broadcast %cst_37 : f32 to vector<16x1xf32>
    %103 = arith.mulf %102, %101 : vector<16x1xf32>
    %cst_38 = arith.constant 0.000000e+00 : f32
    %104 = vector.broadcast %cst_38 : f32 to vector<16x1xf32>
    %105 = arith.cmpf olt, %72, %104 : vector<16x1xf32>
    %cst_39 = arith.constant 3.14159274 : f32
    %106 = vector.broadcast %cst_39 : f32 to vector<16x1xf32>
    %107 = arith.subf %106, %103 : vector<16x1xf32>
    %108 = arith.select %105, %107, %103 : vector<16x1xi1>, vector<16x1xf32>
    %109 = arith.select %75, %98, %108 : vector<16x1xi1>, vector<16x1xf32>
    %cst_40 = arith.constant 2.000000e+00 : f32
    %110 = vector.broadcast %cst_40 : f32 to vector<16x1xf32>
    %111 = arith.mulf %110, %109 : vector<16x1xf32>
    %112 = arith.mulf %111, %56 : vector<16x1xf32>
    %113 = arith.addf %109, %56 : vector<16x1xf32>
    %114 = arith.divf %112, %113 : vector<16x1xf32>
    %cst_41 = arith.constant dense<0.000000e+00> : vector<1xf32>
    %115 = vector.multi_reduction <add>, %114, %cst_41 [0] : vector<16x1xf32> to vector<1xf32>
    %116 = vector.shape_cast %115 : vector<1xf32> to vector<1x1xf32>
    %cst_42 = arith.constant dense<0.000000e+00> : vector<1xf32>
    %117 = vector.multi_reduction <add>, %56, %cst_42 [0] : vector<16x1xf32> to vector<1xf32>
    %118 = vector.shape_cast %117 : vector<1xf32> to vector<1x1xf32>
    %cst_43 = arith.constant 6.250000e-02 : f32
    %119 = vector.broadcast %cst_43 : f32 to vector<1x1xf32>
    %120 = arith.mulf %118, %119 : vector<1x1xf32>
    %cst_44 = arith.constant dense<0.000000e+00> : vector<1xf32>
    %121 = vector.multi_reduction <add>, %109, %cst_44 [0] : vector<16x1xf32> to vector<1xf32>
    %122 = vector.shape_cast %121 : vector<1xf32> to vector<1x1xf32>
    %cst_45 = arith.constant 6.250000e-02 : f32
    %123 = vector.broadcast %cst_45 : f32 to vector<1x1xf32>
    %124 = arith.mulf %122, %123 : vector<1x1xf32>
    %125 = tpu.iota {dimensions = array<i32: 1>} : vector<1x128xi32>
    %c0_i32 = arith.constant 0 : i32
    %126 = vector.broadcast %c0_i32 : i32 to vector<1x128xi32>
    %127 = arith.cmpi eq, %125, %126 : vector<1x128xi32>
    %cst_46 = arith.constant 0.000000e+00 : f32
    %128 = vector.shape_cast %116 : vector<1x1xf32> to vector<1x1xf32>
    %129 = vector.broadcast %128 : vector<1x1xf32> to vector<1x128xf32>
    %130 = vector.broadcast %cst_46 : f32 to vector<1x128xf32>
    %131 = arith.select %127, %129, %130 : vector<1x128xi1>, vector<1x128xf32>
    %c1_i32 = arith.constant 1 : i32
    %132 = vector.broadcast %c1_i32 : i32 to vector<1x128xi32>
    %133 = arith.cmpi eq, %125, %132 : vector<1x128xi32>
    %cst_47 = arith.constant 0.000000e+00 : f32
    %134 = vector.shape_cast %120 : vector<1x1xf32> to vector<1x1xf32>
    %135 = vector.broadcast %134 : vector<1x1xf32> to vector<1x128xf32>
    %136 = vector.broadcast %cst_47 : f32 to vector<1x128xf32>
    %137 = arith.select %133, %135, %136 : vector<1x128xi1>, vector<1x128xf32>
    %138 = arith.addf %131, %137 : vector<1x128xf32>
    %c2_i32 = arith.constant 2 : i32
    %139 = vector.broadcast %c2_i32 : i32 to vector<1x128xi32>
    %140 = arith.cmpi eq, %125, %139 : vector<1x128xi32>
    %cst_48 = arith.constant 0.000000e+00 : f32
    %141 = vector.shape_cast %124 : vector<1x1xf32> to vector<1x1xf32>
    %142 = vector.broadcast %141 : vector<1x1xf32> to vector<1x128xf32>
    %143 = vector.broadcast %cst_48 : f32 to vector<1x128xf32>
    %144 = arith.select %140, %142, %143 : vector<1x128xi1>, vector<1x128xf32>
    %145 = arith.addf %138, %144 : vector<1x128xf32>
    %c0_49 = arith.constant 0 : index
    %c0_50 = arith.constant 0 : index
    %146 = vector.load %arg4[%c0_49, %c0_50] : memref<1x128xf32, #tpu.memory_space<vmem>>, vector<1x128xf32>
    tpu.vector_store %arg4[%c0_49, %c0_50], %145 {strides = array<i32>} : memref<1x128xf32, #tpu.memory_space<vmem>>, vector<1x128xf32>,
    return
  }
}

</mosaic_0001>

<bundles_post_ra>
// kernel: _loss_ar_row.1
= control target key start
LH: loop header
LB: loop body
LE: loop exit
PB: predicated region body
PF: predicated region fallthrough
CT: control target
= control target key end

     0   :  { %vm27_vm0 = vcmask 23552   ;;  %s466_s2 = inlined_call_operand.vmem [shape: f32[16,3], index: 2, kind: input, shape index: {}]   ;;  %s467_s0 = inlined_call_operand.vmem [shape: f32[16,3], index: 0, kind: input, shape index: {}]   ;;  %s468_s1 = inlined_call_operand.vmem [shape: f32[16,3], index: 1, kind: input, shape index: {}]   ;;  %s469_s3 = inlined_call_operand.vmem [shape: f32[16,3], index: 3, kind: input, shape index: {}]   ;;  %s470_s4 = inlined_call_operand.vmem [shape: f32[1,128], index: 4, kind: output, shape index: {}]  }
   0x1   :  { %v21_v0 = vld [vmem:[%s466_s2] sm:$0xff]  ;;  %v22_v2 = vld [vmem:[%s466_s2 + $0x8] sm:$0xff] }
   0x2   :  { %v17_v1 = vld [vmem:[%s467_s0] sm:$0xff]  ;;  %v42_v3 = vmul.f32 %v21_v0, %v21_v0  ;;  %v43_v5 = vmul.f32 %v22_v2, %v22_v2  ;;  %v18_v6 = vld [vmem:[%s467_s0 + $0x8] sm:$0xff] }
   0x3   :  { %v34_v4 = vmul.f32 %v17_v1, %v17_v1  ;;  %v35_v7 = vmul.f32 %v18_v6, %v18_v6  ;;  %v20_v8 = vld [vmem:[%s468_s1 + $0x8] sm:$0xff]  ;;  %v19_v9 = vld [vmem:[%s468_s1] sm:$0xff]  ;;  %v25_v24 = vmul.f32 %v21_v0, %v17_v1  ;;  %v26_v25 = vmul.f32 %v22_v2, %v18_v6 }
   0x4   :  { %v44_v10 = vsel %vm27_vm0, %v42_v3, 0.0  ;;  %v47_v12 = vsel %vm27_vm0, %v43_v5, 0.0  ;;  %v133_v14 = vmul.f32 %v20_v8, %v20_v8  ;;  %v132_v15 = vmul.f32 %v19_v9, %v19_v9  ;;  %v24_v16 = vld [vmem:[%s469_s3 + $0x8] sm:$0xff]  ;;  %v23_v17 = vld [vmem:[%s469_s3] sm:$0xff] }
   0x5   :  { %v36_v11 = vsel %vm27_vm0, %v34_v4, 0.0  ;;  %45 = vadd.xlane.f32.xlu1 %v44_v10  ;;  %v39_v13 = vsel %vm27_vm0, %v35_v7, 0.0  ;;  %v141_v20 = vmul.f32 %v24_v16, %v24_v16  ;;  %v140_v21 = vmul.f32 %v23_v17, %v23_v17 }
   0x6   :  { %37 = vadd.xlane.f32.xlu0 %v36_v11  ;;  %v137_v18 = vsel %vm27_vm0, %v133_v14, 0.0  ;;  %v134_v19 = vsel %vm27_vm0, %v132_v15, 0.0  ;;  %v28_v26 = vsel %vm27_vm0, %v25_v24, 0.0  ;;  %v31_v27 = vsel %vm27_vm0, %v26_v25, 0.0 }
   0x7   :  { %v145_v22 = vsel %vm27_vm0, %v141_v20, 0.0  ;;  %v142_v23 = vsel %vm27_vm0, %v140_v21, 0.0  ;;  %v125_v28 = vmul.f32 %v24_v16, %v20_v8  ;;  %v124_v29 = vmul.f32 %v23_v17, %v19_v9 }
   0x9   :  { %48 = vadd.xlane.f32.xlu1 %v47_v12  ;;  %v129_v30 = vsel %vm27_vm0, %v125_v28, 0.0  ;;  %v126_v31 = vsel %vm27_vm0, %v124_v29, 0.0 }
   0xa   :  { %40 = vadd.xlane.f32.xlu0 %v39_v13 }
   0xd   :  { %138 = vadd.xlane.f32.xlu1 %v137_v18 }
   0xe   :  { %135 = vadd.xlane.f32.xlu0 %v134_v19 }
  0x11   :  { %146 = vadd.xlane.f32.xlu1 %v145_v22 }
  0x12   :  { %143 = vadd.xlane.f32.xlu0 %v142_v23 }
  0x15   :  { %32 = vadd.xlane.f32.xlu1 %v31_v27 }
  0x16   :  { %29 = vadd.xlane.f32.xlu0 %v28_v26 }
  0x19   :  { %130 = vadd.xlane.f32.xlu1 %v129_v30 }
  0x1a   :  { %127 = vadd.xlane.f32.xlu0 %v126_v31 }
  0x8e   :  { %v46_v32 = vpop.xlane.xlu1 %45 }
  0x8f   :  { %v38_v33 = vpop.xlane.xlu0 %37 }
  0x90   :  { %v50_v34 = vmul.f32 %v46_v32, %v38_v33 }
  0x92   :  { %274 = vrsqrt.f32 %v50_v34  ;;  %v49_v35 = vpop.xlane.xlu1 %48 }
  0x93   :  { %v41_v36 = vpop.xlane.xlu0 %40 }
  0x94   :  { %v51_v37 = vmul.f32 %v49_v35, %v41_v36 }
  0x96   :  { %276 = vrsqrt.f32 %v51_v37  ;;  %v139_v38 = vpop.xlane.xlu1 %138 }
  0x97   :  { %v136_v39 = vpop.xlane.xlu0 %135 }
  0x9a   :  { %v147_v40 = vpop.xlane.xlu1 %146 }
  0x9b   :  { %v144_v41 = vpop.xlane.xlu0 %143  ;;  %v149_v42 = vmul.f32 %v147_v40, %v139_v38 }
  0x9c   :  { %v148_v43 = vmul.f32 %v144_v41, %v136_v39 }
  0x9d   :  { %278 = vrsqrt.f32 %v149_v42 }
  0x9e   :  { %280 = vrsqrt.f32 %v148_v43  ;;  %v33_v47 = vpop.xlane.xlu1 %32 }
  0x9f   :  { %v275_v44 = vpop.eup %274  ;;  %v30_v45 = vpop.xlane.xlu0 %29 }
  0xa0   :  { %v54_v46 = vmul.f32 %v275_v44, %v30_v45 }
  0xa2   :  { %v363_v48 = vclamps-f32 %v54_v46, 1.0  ;;  %v131_v58 = vpop.xlane.xlu1 %130 }
  0xa3   :  { %v277_v49 = vpop.eup %276  ;;  %v128_v63 = vpop.xlane.xlu0 %127 }
  0xa4   :  { %v60_v50 = vand.u32 2147483647, %v363_v48  ;;  %v55_v51 = vmul.f32 %v277_v49, %v33_v47  ;;  %v64_v54 = vmul.f32 %v363_v48, %v363_v48  ;;  %vm116_vm15 = vcmp.lt.f32.partialorder %v363_v48, 0.0 }
  0xa6   :  { %v66_v52 = vsub.f32 1.0, %v60_v50  ;;  %v366_v53 = vclamps-f32 %v55_v51, 1.0  ;;  %vm371_vm1 = vcmp.lt.f32.partialorder %v60_v50, 0.5 }
  0xa8   :  { %v68_v55 = vmul.f32 0.5, %v66_v52  ;;  %v61_v56 = vand.u32 2147483647, %v366_v53  ;;  %v65_v1 = vmul.f32 %v366_v53, %v366_v53  ;;  %vm117_vm13 = vcmp.lt.f32.partialorder %v366_v53, 0.0 }
  0xaa   :  { %v377_v59 = vsel %vm371_vm1, %v64_v54, %v68_v55  ;;  %v67_v60 = vsub.f32 1.0, %v61_v56  ;;  %v279_v61 = vpop.eup %278  ;;  %vm383_vm2 = vcmp.lt.f32.partialorder %v61_v56, 0.5 }
  0xab   :  { %v82_v62 = vmul.f32 -0.70662963, %v377_v59  ;;  %v281_v0 = vpop.eup %280  ;;  %v153_v3 = vmul.f32 %v279_v61, %v131_v58  ;;  %282 = vrsqrt.f32 %v377_v59  ;;  %v72_v11 = vmul.f32 -0.008656363, %v377_v59 }
  0xac   :  { %v69_v2 = vmul.f32 0.5, %v67_v60  ;;  %v152_v8 = vmul.f32 %v281_v0, %v128_v63  ;;  %vm98_vm6 = vcmp.eq.f32.partialorder %v377_v59, inf  ;;  %v101_v58 = vand.u32 2147483648, %v377_v59 }
  0xad   :  { %v84_v5 = vadd.f32 1.0, %v82_v62  ;;  %v389_v7 = vclamps-f32 %v153_v3, 1.0  ;;  %v74_v16 = vadd.f32 -0.042743422, %v72_v11  ;;  %vm100_vm8 = vcmp.eq.f32.partialorder %v377_v59, 0.0 }
  0xae   :  { %v71_v6 = vsel %vm383_vm2, %v65_v1, %v69_v2  ;;  %v393_v14 = vclamps-f32 %v152_v8, 1.0 }
  0xaf   :  { %v73_v9 = vmul.f32 -0.008656363, %v71_v6  ;;  %v83_v10 = vmul.f32 -0.70662963, %v71_v6  ;;  %284 = vrsqrt.f32 %v71_v6  ;;  %v159_v13 = vand.u32 2147483647, %v389_v7 }
  0xb0   :  { %286 = vrcp.f32 %v84_v5  ;;  %v158_v18 = vand.u32 2147483647, %v393_v14  ;;  %v163_v19 = vmul.f32 %v389_v7, %v389_v7  ;;  %v76_v24 = vmul.f32 %v74_v16, %v377_v59 }
  0xb1   :  { %v85_v12 = vadd.f32 1.0, %v83_v10  ;;  %v75_v15 = vadd.f32 -0.042743422, %v73_v9  ;;  %v165_v17 = vsub.f32 1.0, %v159_v13  ;;  %vm398_vm3 = vcmp.lt.f32.partialorder %v159_v13, 0.5 }
  0xb2   :  { %v164_v21 = vsub.f32 1.0, %v158_v18  ;;  %v162_v26 = vmul.f32 %v393_v14, %v393_v14  ;;  %vm412_vm4 = vcmp.lt.f32.partialorder %v158_v18, 0.5  ;;  %v78_v35 = vadd.f32 0.16666587, %v76_v24 }
  0xb3   :  { %288 = vrcp.f32 %v85_v12  ;;  %v167_v20 = vmul.f32 0.5, %v165_v17  ;;  %v77_v22 = vmul.f32 %v75_v15, %v71_v6  ;;  %vm105_vm5 = vcmp.eq.f32.partialorder %v71_v6, inf }
  0xb4   :  { %v166_v27 = vmul.f32 0.5, %v164_v21  ;;  %v108_v45 = vand.u32 2147483648, %v71_v6  ;;  %v80_v47 = vmul.f32 %v78_v35, %v377_v59  ;;  %vm107_vm7 = vcmp.eq.f32.partialorder %v71_v6, 0.0 }
  0xb5   :  { %v405_v25 = vsel %vm398_vm3, %v163_v19, %v167_v20  ;;  %v79_v33 = vadd.f32 0.16666587, %v77_v22  ;;  %vm215_vm14 = vcmp.lt.f32.partialorder %v389_v7, 0.0  ;;  %vm214_vm0 = vcmp.lt.f32.partialorder %v393_v14, 0.0 }
  0xb6   :  { %v171_v28 = vmul.f32 -0.008656363, %v405_v25  ;;  %v181_v29 = vmul.f32 -0.70662963, %v405_v25  ;;  %290 = vrsqrt.f32 %v405_v25  ;;  %v418_v32 = vsel %vm412_vm4, %v162_v26, %v166_v27 }
  0xb7   :  { %v170_v36 = vmul.f32 -0.008656363, %v418_v32  ;;  %v180_v37 = vmul.f32 -0.70662963, %v418_v32  ;;  %292 = vrsqrt.f32 %v418_v32  ;;  %v81_v44 = vmul.f32 %v79_v33, %v71_v6 }
  0xb8   :  { %v283_v31 = vpop.eup %282  ;;  %v183_v34 = vadd.f32 1.0, %v181_v29  ;;  %v173_v39 = vadd.f32 -0.042743422, %v171_v28  ;;  %vm203_vm9 = vcmp.eq.f32.partialorder %v405_v25, inf  ;;  %vm205_vm10 = vcmp.eq.f32.partialorder %v405_v25, 0.0 }
  0xb9   :  { %v97_v40 = vmul.f32 %v283_v31, %v377_v59  ;;  %v182_v42 = vadd.f32 1.0, %v180_v37  ;;  %v172_v50 = vadd.f32 -0.042743422, %v170_v36  ;;  %vm196_vm11 = vcmp.eq.f32.partialorder %v418_v32, inf }
  0xba   :  { %294 = vrcp.f32 %v183_v34  ;;  %v175_v52 = vmul.f32 %v173_v39, %v405_v25  ;;  %v199_v24 = vand.u32 2147483648, %v418_v32  ;;  %vm198_vm12 = vcmp.eq.f32.partialorder %v418_v32, 0.0 }
  0xbb   :  { %296 = vrcp.f32 %v182_v42  ;;  %v99_v55 = vsel %vm98_vm6, %v377_v59, %v97_v40  ;;  %v174_v61 = vmul.f32 %v172_v50, %v418_v32  ;;  %v206_v59 = vand.u32 2147483648, %v405_v25 }
  0xbc   :  { %v285_v38 = vpop.eup %284  ;;  %v102_v62 = vsel %vm100_vm8, %v101_v58, %v99_v55  ;;  %v177_v63 = vadd.f32 0.16666587, %v175_v52 }
  0xbd   :  { %v104_v41 = vmul.f32 %v285_v38, %v71_v6  ;;  %v287_v43 = vpop.eup %286  ;;  %v176_v5 = vadd.f32 0.16666587, %v174_v61 }
  0xbe   :  { %v87_v54 = vmul.f32 %v287_v43, %v80_v47  ;;  %v179_v8 = vmul.f32 %v177_v63, %v405_v25 }
  0xbf   :  { %v106_v49 = vsel %vm105_vm5, %v71_v6, %v104_v41  ;;  %v178_v18 = vmul.f32 %v176_v5, %v418_v32 }
  0xc0   :  { %v289_v46 = vpop.eup %288  ;;  %v109_v56 = vsel %vm107_vm7, %v108_v45, %v106_v49  ;;  %v110_v1 = vmul.f32 %v102_v62, %v87_v54 }
  0xc1   :  { %v89_v51 = vmul.f32 %v289_v46, %v81_v44 }
  0xc2   :  { %v112_v11 = vadd.f32 %v110_v1, %v102_v62 }
  0xc3   :  { %v111_v60 = vmul.f32 %v109_v56, %v89_v51  ;;  %v291_v0 = vpop.eup %290  ;;  %v91_v16 = vmul.f32 %v366_v53, %v89_v51 }
  0xc4   :  { %v202_v3 = vmul.f32 %v291_v0, %v405_v25  ;;  %v293_v6 = vpop.eup %292  ;;  %v114_v26 = vmul.f32 2.0, %v112_v11 }
  0xc5   :  { %v113_v2 = vadd.f32 %v111_v60, %v109_v56  ;;  %v195_v12 = vmul.f32 %v293_v6, %v418_v32  ;;  %v93_v33 = vadd.f32 %v366_v53, %v91_v16 }
  0xc6   :  { %v204_v9 = vsel %vm203_vm9, %v405_v25, %v202_v3  ;;  %v90_v25 = vmul.f32 %v363_v48, %v87_v54  ;;  %v118_v38 = vsub.f32 3.1415927, %v114_v26 }
  0xc7   :  { %v295_v10 = vpop.eup %294  ;;  %v115_v13 = vmul.f32 2.0, %v113_v2  ;;  %v207_v17 = vsel %vm205_vm10, %v206_v59, %v204_v9  ;;  %v197_v19 = vsel %vm196_vm11, %v418_v32, %v195_v12  ;;  %v95_v43 = vsub.f32 1.5707964, %v93_v33 }
  0xc8   :  { %v187_v15 = vmul.f32 %v295_v10, %v179_v8  ;;  %v297_v20 = vpop.eup %296  ;;  %v200_v31 = vsel %vm198_vm12, %v199_v24, %v197_v19  ;;  %v92_v40 = vadd.f32 %v363_v48, %v90_v25  ;;  %v120_v47 = vsel %vm116_vm15, %v118_v38, %v114_v26 }
  0xc9   :  { %v185_v27 = vmul.f32 %v297_v20, %v178_v18  ;;  %v119_v28 = vsub.f32 3.1415927, %v115_v13  ;;  %v255_v12 = vlaneseq }
  0xca   :  { %v189_v21 = vmul.f32 %v389_v7, %v187_v15  ;;  %v209_v22 = vmul.f32 %v207_v17, %v187_v15  ;;  %v94_v51 = vsub.f32 1.5707964, %v92_v40 }
  0xcb   :  { %v188_v35 = vmul.f32 %v393_v14, %v185_v27  ;;  %v208_v36 = vmul.f32 %v200_v31, %v185_v27  ;;  %v121_v32 = vsel %vm117_vm13, %v119_v28, %v115_v13  ;;  %v256_v18 = vand.u32 127, %v255_v12 }
  0xcc   :  { %v211_v29 = vadd.f32 %v209_v22, %v207_v17  ;;  %v191_v34 = vadd.f32 %v389_v7, %v189_v21  ;;  %v123_v49 = vsel %vm383_vm2, %v95_v43, %v121_v32  ;;  %v122_v7 = vsel %vm371_vm1, %v94_v51, %v120_v47 }
  0xcd   :  { %v210_v39 = vadd.f32 %v208_v36, %v200_v31  ;;  %v190_v42 = vadd.f32 %v393_v14, %v188_v35  ;;  %v239_v56 = vadd.f32 %v123_v49, %v122_v7  ;;  %vm259_vm1 = vcmp.eq.s32.totalorder %v256_v18, 1 }
  0xce   :  { %v213_v37 = vmul.f32 2.0, %v211_v29  ;;  %v193_v44 = vsub.f32 1.5707964, %v191_v34  ;;  %vm257_vm2 = vcmp.eq.s32.totalorder %v256_v18, 0 }
  0xcf   :  { %v212_v45 = vmul.f32 2.0, %v210_v39  ;;  %v192_v54 = vsub.f32 1.5707964, %v190_v42  ;;  %v240_v23 = vrot.slane %v239_v56, 4 }
  0xd0   :  { %v217_v41 = vsub.f32 3.1415927, %v213_v37 }
  0xd1   :  { %v216_v50 = vsub.f32 3.1415927, %v212_v45  ;;  %v241_v61 = vadd.f32 %v240_v23, %v239_v56 }
  0xd2   :  { %v219_v46 = vsel %vm215_vm14, %v217_v41, %v213_v37 }
  0xd3   :  { %v221_v53 = vsel %vm398_vm3, %v193_v44, %v219_v46  ;;  %v218_v55 = vsel %vm214_vm0, %v216_v50, %v212_v45  ;;  %v242_v14 = vrot.slane %v241_v61, 2  ;;  %vm262_vm3 = vcmp.eq.s32.totalorder %v256_v18, 2 }
  0xd4   :  { %v227_v52 = vadd.f32 %v221_v53, %v123_v49  ;;  %v220_v48 = vsel %vm412_vm4, %v192_v54, %v218_v55  ;;  %v223_v62 = vmul.f32 2.0, %v221_v53 }
  0xd5   :  { %v226_v4 = vadd.f32 %v220_v48, %v122_v7  ;;  %v247_v58 = vadd.f32 %v221_v53, %v220_v48  ;;  %v222_v63 = vmul.f32 2.0, %v220_v48  ;;  %v243_v8 = vadd.f32 %v242_v14, %v241_v61 }
  0xd6   :  { %298 = vrcp.f32 %v227_v52  ;;  %v225_v2 = vmul.f32 %v223_v62, %v123_v49 }
  0xd7   :  { %300 = vrcp.f32 %v226_v4  ;;  %v248_v60 = vrot.slane %v247_v58, 4  ;;  %v224_v57 = vmul.f32 %v222_v63, %v122_v7  ;;  %v244_v11 = vrot.slane %v243_v8, 1 }
  0xd9   :  { %v249_v0 = vadd.f32 %v248_v60, %v247_v58  ;;  %v245_v16 = vadd.f32 %v244_v11, %v243_v8 }
  0xdb   :  { %v250_v5 = vrot.slane %v249_v0, 2  ;;  %v246_v21 = vmul.f32 0.0625, %v245_v16 }
  0xdd   :  { %v251_v10 = vadd.f32 %v250_v5, %v249_v0  ;;  %v260_v27 = vsel %vm259_vm1, %v246_v21, 0.0 }
  0xdf   :  { %v252_v15 = vrot.slane %v251_v10, 1 }
  0xe1   :  { %v253_v20 = vadd.f32 %v252_v15, %v251_v10 }
  0xe3   :  { %v299_v1 = vpop.eup %298  ;;  %v254_v26 = vmul.f32 0.0625, %v253_v20 }
  0xe4   :  { %v231_v3 = vmul.f32 %v299_v1, %v225_v2  ;;  %v301_v6 = vpop.eup %300 }
  0xe5   :  { %v229_v30 = vmul.f32 %v301_v6, %v224_v57  ;;  %v263_v29 = vsel %vm262_vm3, %v254_v26, 0.0 }
  0xe7   :  { %v232_v9 = vadd.f32 %v231_v3, %v229_v30 }
  0xe9   :  { %v233_v59 = vrot.slane %v232_v9, 4 }
  0xeb   :  { %v234_v13 = vadd.f32 %v233_v59, %v232_v9 }
  0xed   :  { %v235_v17 = vrot.slane %v234_v13, 2 }
  0xef   :  { %v236_v19 = vadd.f32 %v235_v17, %v234_v13 }
  0xf1   :  { %v237_v22 = vrot.slane %v236_v19, 1 }
  0xf3   :  { %v238_v24 = vadd.f32 %v237_v22, %v236_v19 }
  0xf5   :  { %v258_v25 = vsel %vm257_vm2, %v238_v24, 0.0 }
  0xf6   :  { %v261_v28 = vadd.f32 %v260_v27, %v258_v25 }
  0xf8   :  { %v264_v31 = vadd.f32 %v263_v29, %v261_v28 }
  0xfa   :  { %265 = vst [vmem:[%s470_s4] sm:$0x1] %v264_v31 }

</bundles_post_ra>
